<compile_context>
chip_gen: v7x
topology: tpu7x:2x2x1
jax: 0.10.0
libtpu: 0.0.40
codegen_flags: <defaults>
</compile_context>

<pallas_src>
import functools

import numpy as np
import jax
import jax.numpy as jnp
from jax.experimental import pallas as pl
from jax.experimental.pallas import tpu as pltpu


def sdpa_kernel(q_ref, kt_ref, v_ref, out_ref, attn_ref, log_attn_ref,
                *, inv_temperature):
    """Fused scaled dot-product attention for one (batch, q-tile) block.

      q_ref:        (1, Tq, Dk)   bf16
      kt_ref:       (1, Dk, Lk)   bf16 (K pre-transposed in the wrapper)
      v_ref:        (1, Lk, Dv)   bf16
      out_ref:      (1, Tq, Dv)   f32
      attn_ref:     (1, Tq, Lk)   bf16 (default)
      log_attn_ref: (1, Tq, Lk)   bf16 (default)
    """
    # Fold the temperature into q: touches Tq*Dk elements instead of Tq*Lk.
    q = q_ref[0] * inv_temperature        # stays bf16 (weak-typed scalar)
    kt = kt_ref[0]                        # (Dk, Lk) bf16
    v = v_ref[0]                          # (Lk, Dv) bf16

    # scores = (q / temperature) @ k^T  — bf16 MXU matmul, f32 accumulation.
    s = jnp.dot(q, kt, preferred_element_type=jnp.float32)   # (Tq, Lk) f32

    # softmax / log_softmax along the key axis (full Lk resident in VMEM).
    m = jnp.max(s, axis=-1, keepdims=True)
    z = s - m
    e = jnp.exp(z)                        # f32 exp (works on all generations)
    denom = jnp.sum(e, axis=-1, keepdims=True)
    attn = e * pl.reciprocal(denom, approx=True)
    log_attn = z - jnp.log(denom)

    # Cast attention probabilities to bf16 so the PV matmul also takes the
    # bf16 MXU path (f32 accumulation).
    p = attn.astype(v_ref.dtype)
    out = jnp.dot(p, v, preferred_element_type=jnp.float32)

    out_ref[0] = out.astype(out_ref.dtype)
    attn_ref[0] = attn.astype(attn_ref.dtype)
    log_attn_ref[0] = log_attn.astype(log_attn_ref.dtype)


def scaled_dot_product_attention_pallas(q, k, v, temperature, *,
                                        block_q=256,
                                        compute_dtype=jnp.bfloat16,
                                        probs_dtype=jnp.bfloat16,
                                        out_dtype=jnp.float32):
    """q: (B, Lq, Dk), k: (B, Lk, Dk), v: (B, Lk, Dv) -> (output, attn, log_attn).

    block_q defaults to 256 to fill v6e/v7x's 256-wide MXU at production
    shapes; at large (block_q, Lk) on v7x (64 MiB VMEM) reduce block_q or set
    pltpu.CompilerParams(vmem_limit_bytes=...) with headroom.
    """
    B, Lq, Dk = q.shape
    Bk, Lk, Dk2 = k.shape
    Bv, Lk2, Dv = v.shape
    assert B == Bk == Bv and Dk == Dk2 and Lk == Lk2

    block_q = min(block_q, Lq)
    assert Lq % block_q == 0, "Lq must be divisible by the q tile size"
    nq = Lq // block_q

    # bf16 operands: ~3-6x MXU throughput and half the Q/K/V HBM traffic.
    # K is transposed once here (XLA, once per call) rather than per grid step.
    q_c = q.astype(compute_dtype)
    kt_c = jnp.swapaxes(k, 1, 2).astype(compute_dtype)   # (B, Dk, Lk)
    v_c = v.astype(compute_dtype)

    kernel = functools.partial(sdpa_kernel,
                               inv_temperature=float(1.0 / temperature))

    out_shapes = (
        jax.ShapeDtypeStruct((B, Lq, Dv), out_dtype),     # output
        jax.ShapeDtypeStruct((B, Lq, Lk), probs_dtype),   # attn
        jax.ShapeDtypeStruct((B, Lq, Lk), probs_dtype),   # log_attn
    )

    return pl.pallas_call(
        kernel,
        out_shape=out_shapes,
        grid_spec=pltpu.PrefetchScalarGridSpec(
            num_scalar_prefetch=0,
            grid=(B, nq),   # b outermost => K/V DMAs elided across q tiles
            in_specs=[
                pl.BlockSpec((1, block_q, Dk), lambda b, i: (b, i, 0)),
                pl.BlockSpec((1, Dk, Lk), lambda b, i: (b, 0, 0)),
                pl.BlockSpec((1, Lk, Dv), lambda b, i: (b, 0, 0)),
            ],
            out_specs=[
                pl.BlockSpec((1, block_q, Dv), lambda b, i: (b, i, 0)),
                pl.BlockSpec((1, block_q, Lk), lambda b, i: (b, i, 0)),
                pl.BlockSpec((1, block_q, Lk), lambda b, i: (b, i, 0)),
            ],
        ),
        compiler_params=pltpu.CompilerParams(
            dimension_semantics=("parallel", "parallel")),
    )(q_c, kt_c, v_c)


def scaled_dot_product_attention_ref(q, k, v, temperature):
    """Pure-JAX f32 reference mirroring the PyTorch forward (eval mode)."""
    attn = jnp.einsum("bqd,bkd->bqk", q, k) / temperature
    log_attn = jax.nn.log_softmax(attn, axis=2)
    attn_sm = jax.nn.softmax(attn, axis=2)
    out = jnp.einsum("bqk,bkd->bqd", attn_sm, v)
    return out, attn_sm, log_attn


if __name__ == "__main__":
    root = jax.random.PRNGKey(0)
    kq, kk, kv = jax.random.split(root, 3)

    # Small, TPU-friendly shapes: batch=2, seq=128, head dim=64.
    B, Lq, Lk, Dk, Dv = 2, 128, 128, 64, 64
    q = jax.random.normal(kq, (B, Lq, Dk), jnp.float32)
    k = jax.random.normal(kk, (B, Lk, Dk), jnp.float32)
    v = jax.random.normal(kv, (B, Lk, Dv), jnp.float32)
    temperature = float(np.power(Dk, 0.5))

    out, attn, log_attn = scaled_dot_product_attention_pallas(
        q, k, v, temperature)
    out, attn, log_attn = jax.block_until_ready((out, attn, log_attn))

    ref_out, ref_attn, ref_log_attn = jax.block_until_ready(
        scaled_dot_product_attention_ref(q, k, v, temperature))

    # Tolerances account for the bf16 matmul operands / bf16 attn & log_attn
    # outputs (f32 accumulation throughout).
    np.testing.assert_allclose(np.asarray(attn, dtype=np.float32),
                               np.asarray(ref_attn), rtol=2e-2, atol=2e-2)
    np.testing.assert_allclose(np.asarray(log_attn, dtype=np.float32),
                               np.asarray(ref_log_attn), rtol=2e-2, atol=2e-2)
    np.testing.assert_allclose(np.asarray(out),
                               np.asarray(ref_out), rtol=2e-2, atol=2e-2)
    print("KERNEL_OK")
</pallas_src>

<mosaic_0001>
module attributes {stable_mosaic.version = 11 : i64} {
  func.func @sdpa_kernel(%arg0: i32, %arg1: i32, %arg2: memref<1x128x64xbf16, #tpu.memory_space<vmem>>, %arg3: memref<1x64x128xbf16, #tpu.memory_space<vmem>>, %arg4: memref<1x128x64xbf16, #tpu.memory_space<vmem>>, %arg5: memref<1x128x64xf32, #tpu.memory_space<vmem>>, %arg6: memref<1x128x128xbf16, #tpu.memory_space<vmem>>, %arg7: memref<1x128x128xbf16, #tpu.memory_space<vmem>>) attributes {dimension_semantics = [#tpu.dimension_semantics<parallel>, #tpu.dimension_semantics<parallel>], iteration_bounds = array<i64: 2, 1>, scalar_prefetch = 0 : i64, scratch_operands = 0 : i64, tpu.core_type = #tpu.core_type<tc>, window_params = [{transform_indices = @transform_0, window_bounds = array<i64: 1, 128, 64>}, {transform_indices = @transform_1, window_bounds = array<i64: 1, 64, 128>}, {transform_indices = @transform_2, window_bounds = array<i64: 1, 128, 64>}, {transform_indices = @transform_3, window_bounds = array<i64: 1, 128, 64>}, {transform_indices = @transform_4, window_bounds = array<i64: 1, 128, 128>}, {transform_indices = @transform_5, window_bounds = array<i64: 1, 128, 128>}]} {
    %c0 = arith.constant 0 : index
    %c0_0 = arith.constant 0 : index
    %c0_1 = arith.constant 0 : index
    %0 = vector.load %arg2[%c0, %c0_0, %c0_1] : memref<1x128x64xbf16, #tpu.memory_space<vmem>>, vector<1x128x64xbf16>
    %1 = vector.shape_cast %0 : vector<1x128x64xbf16> to vector<128x64xbf16>
    %cst = arith.constant 1.250000e-01 : bf16
    %2 = vector.broadcast %cst : bf16 to vector<128x64xbf16>
    %3 = arith.mulf %1, %2 : vector<128x64xbf16>
    %c0_2 = arith.constant 0 : index
    %c0_3 = arith.constant 0 : index
    %c0_4 = arith.constant 0 : index
    %4 = vector.load %arg3[%c0_2, %c0_3, %c0_4] : memref<1x64x128xbf16, #tpu.memory_space<vmem>>, vector<1x64x128xbf16>
    %5 = vector.shape_cast %4 : vector<1x64x128xbf16> to vector<64x128xbf16>
    %c0_5 = arith.constant 0 : index
    %c0_6 = arith.constant 0 : index
    %c0_7 = arith.constant 0 : index
    %6 = vector.load %arg4[%c0_5, %c0_6, %c0_7] : memref<1x128x64xbf16, #tpu.memory_space<vmem>>, vector<1x128x64xbf16>
    %7 = vector.shape_cast %6 : vector<1x128x64xbf16> to vector<128x64xbf16>
    %cst_8 = arith.constant dense<0.000000e+00> : vector<128x128xf32>
    %8 = tpu.matmul %3, %5, %cst_8 {dimension_numbers = #tpu.dot_dimension_numbers<[1], [0], [0], [1], [0, 0, 1, 1], [], []>} : vector<128x64xbf16>, vector<64x128xbf16>, vector<128x128xf32> -> vector<128x128xf32>
    %cst_9 = arith.constant dense<0xFF800000> : vector<128xf32>
    %9 = vector.multi_reduction <maximumf>, %8, %cst_9 [1] : vector<128x128xf32> to vector<128xf32>
    %10 = vector.shape_cast %9 : vector<128xf32> to vector<128x1xf32>
    %11 = vector.broadcast %10 : vector<128x1xf32> to vector<128x128xf32>
    %12 = arith.subf %8, %11 : vector<128x128xf32>
    %13 = math.exp %12 : vector<128x128xf32>
    %cst_10 = arith.constant dense<0.000000e+00> : vector<128xf32>
    %14 = vector.multi_reduction <add>, %13, %cst_10 [1] : vector<128x128xf32> to vector<128xf32>
    %15 = vector.shape_cast %14 : vector<128xf32> to vector<128x1xf32>
    %16 = tpu.reciprocal %15 {approx = true} : vector<128x1xf32> -> vector<128x1xf32>
    %17 = vector.broadcast %16 : vector<128x1xf32> to vector<128x128xf32>
    %18 = arith.mulf %13, %17 : vector<128x128xf32>
    %19 = math.log %15 : vector<128x1xf32>
    %20 = vector.broadcast %19 : vector<128x1xf32> to vector<128x128xf32>
    %21 = arith.subf %12, %20 : vector<128x128xf32>
    %22 = arith.truncf %18 : vector<128x128xf32> to vector<128x128xbf16>
    %cst_11 = arith.constant dense<0.000000e+00> : vector<128x64xf32>
    %23 = tpu.matmul %22, %7, %cst_11 {dimension_numbers = #tpu.dot_dimension_numbers<[1], [0], [0], [1], [0, 0, 1, 1], [], []>} : vector<128x128xbf16>, vector<128x64xbf16>, vector<128x64xf32> -> vector<128x64xf32>
    %c0_12 = arith.constant 0 : index
    %c0_13 = arith.constant 0 : index
    %c0_14 = arith.constant 0 : index
    %24 = vector.load %arg5[%c0_12, %c0_13, %c0_14] : memref<1x128x64xf32, #tpu.memory_space<vmem>>, vector<1x128x64xf32>
    %25 = vector.shape_cast %24 : vector<1x128x64xf32> to vector<128x64xf32>
    %26 = vector.shape_cast %23 : vector<128x64xf32> to vector<1x128x64xf32>
    tpu.vector_store %arg5[%c0_12, %c0_13, %c0_14], %26 {strides = array<i32>} : memref<1x128x64xf32, #tpu.memory_space<vmem>>, vector<1x128x64xf32>,
    %27 = arith.truncf %18 : vector<128x128xf32> to vector<128x128xbf16>
    %c0_15 = arith.constant 0 : index
    %c0_16 = arith.constant 0 : index
    %c0_17 = arith.constant 0 : index
    %28 = vector.load %arg6[%c0_15, %c0_16, %c0_17] : memref<1x128x128xbf16, #tpu.memory_space<vmem>>, vector<1x128x128xbf16>
    %29 = vector.shape_cast %28 : vector<1x128x128xbf16> to vector<128x128xbf16>
    %30 = vector.shape_cast %27 : vector<128x128xbf16> to vector<1x128x128xbf16>
    tpu.vector_store %arg6[%c0_15, %c0_16, %c0_17], %30 {strides = array<i32>} : memref<1x128x128xbf16, #tpu.memory_space<vmem>>, vector<1x128x128xbf16>,
    %31 = arith.truncf %21 : vector<128x128xf32> to vector<128x128xbf16>
    %c0_18 = arith.constant 0 : index
    %c0_19 = arith.constant 0 : index
    %c0_20 = arith.constant 0 : index
    %32 = vector.load %arg7[%c0_18, %c0_19, %c0_20] : memref<1x128x128xbf16, #tpu.memory_space<vmem>>, vector<1x128x128xbf16>
    %33 = vector.shape_cast %32 : vector<1x128x128xbf16> to vector<128x128xbf16>
    %34 = vector.shape_cast %31 : vector<128x128xbf16> to vector<1x128x128xbf16>
    tpu.vector_store %arg7[%c0_18, %c0_19, %c0_20], %34 {strides = array<i32>} : memref<1x128x128xbf16, #tpu.memory_space<vmem>>, vector<1x128x128xbf16>,
    return
  }
  func.func @transform_0(%arg0: i32, %arg1: i32) -> (i32, i32, i32) {
    %c0_i32 = arith.constant 0 : i32
    %c0_i32_0 = arith.constant 0 : i32
    return %arg0, %arg1, %c0_i32 : i32, i32, i32
  }
  func.func @transform_1(%arg0: i32, %arg1: i32) -> (i32, i32, i32) {
    %c0_i32 = arith.constant 0 : i32
    %c0_i32_0 = arith.constant 0 : i32
    %c0_i32_1 = arith.constant 0 : i32
    return %arg0, %c0_i32, %c0_i32_0 : i32, i32, i32
  }
  func.func @transform_2(%arg0: i32, %arg1: i32) -> (i32, i32, i32) {
    %c0_i32 = arith.constant 0 : i32
    %c0_i32_0 = arith.constant 0 : i32
    %c0_i32_1 = arith.constant 0 : i32
    return %arg0, %c0_i32, %c0_i32_0 : i32, i32, i32
  }
  func.func @transform_3(%arg0: i32, %arg1: i32) -> (i32, i32, i32) {
    %c0_i32 = arith.constant 0 : i32
    %c0_i32_0 = arith.constant 0 : i32
    return %arg0, %arg1, %c0_i32 : i32, i32, i32
  }
  func.func @transform_4(%arg0: i32, %arg1: i32) -> (i32, i32, i32) {
    %c0_i32 = arith.constant 0 : i32
    %c0_i32_0 = arith.constant 0 : i32
    return %arg0, %arg1, %c0_i32 : i32, i32, i32
  }
  func.func @transform_5(%arg0: i32, %arg1: i32) -> (i32, i32, i32) {
    %c0_i32 = arith.constant 0 : i32
    %c0_i32_0 = arith.constant 0 : i32
    return %arg0, %arg1, %c0_i32 : i32, i32, i32
  }
}

</mosaic_0001>

<bundles_post_ra>
// kernel: tpu_custom_call.1
= control target key start
LH: loop header
LB: loop body
LE: loop exit
PB: predicated region body
PF: predicated region fallthrough
CT: control target
= control target key end

     0   :  { %s2367_s0 = inlined_call_operand.vmem [shape: bf16[2,128,64], index: 0, kind: input, shape index: {}]   ;;  %s2368_s1 = inlined_call_operand.vmem [shape: bf16[2,64,128], index: 1, kind: input, shape index: {}]   ;;  %s2369_s2 = inlined_call_operand.vmem [shape: bf16[2,128,64], index: 2, kind: input, shape index: {}]   ;;  %s2370_s3 = inlined_call_operand.vmem [shape: f32[2,128,64], index: 3, kind: output, shape index: {0}]   ;;  %s2371_s4 = inlined_call_operand.hbm [shape: bf16[2,128,128], index: 4, kind: output, shape index: {1}]   ;;  %s2372_s5 = inlined_call_operand.hbm [shape: bf16[2,128,128], index: 5, kind: output, shape index: {2}]  }
   0x1   :  { %2373 = sst [smem:[#allocation8_spill]] %s2367_s0 }
   0x2   :  { %11 = vsyncpa [#allocation3], 0 }
   0x3   :  { %13 = vsyncpa [#allocation3 + $0x1], 0 }
   0x4   :  { %14 = vsyncpa [#allocation5], 0 }
   0x5   :  { %16 = vsyncpa [#allocation5 + $0x1], 0  ;;  %s1946_s18 = smov 0   ;;  %s1948_s19 = smov 0  }
   0x6   :  { %s1950_s20 = smov 0   ;;  %s1952_s21 = smov 0  }
   0x7   :  { %s1954_s22 = smov 0   ;;  %s1956_s23 = smov 0  }
   0x8 LB: > { %s1315_s24 = sadd.s32 4294967295, %s1910_s23   ;;  %s1316_s25 = sadd.s32 4294967294, %s1910_s23   ;;  %s1910_s23 = sphi %s1956_s23, %s22_s23   ;;  %s1906_s22 = sphi %s1954_s22, %s2381_s22   ;;  %s1902_s21 = sphi %s1952_s21, %s2380_s21   ;;  %s1898_s20 = sphi %s1950_s20, %s2379_s20   ;;  %s1894_s19 = sphi %s1948_s19, %s2378_s19   ;;  %s1890_s18 = sphi %s1946_s18, %s2377_s18  }
   0x9   : > { %s34_s26 = sadd.s32 1, %s1906_s22  ;;  %s151_s27 = sadd.s32 1, %s1898_s20 }
   0xa   : > { %p36_p0 = scmp.ge.s32.totalorder %s34_s26, 2  ;;  %p161_p1 = scmp.ne.s32.totalorder %s1898_s20, %s1894_s19 }
   0xb   : > { %p162_p2 = scmp.eq.s32.totalorder %s1315_s24, 1  ;;  %p167_p3 = scmp.ne.s32.totalorder %s1894_s19, %s1890_s18 }
   0xc   : > { %s2383_s26 = smov (%p36_p0, %s34_s26), 0  ;;  %p168_p5 = scmp.eq.s32.totalorder %s1316_s25, 1 }
   0xd   : > { %p1986_p4 = por %p162_p2, %p161_p1  ;;  %s146_s29 = ssub.s32 %s1906_s22, %s2383_s26 }
   0xe   : > { %p1319_p6 = scmp.ge.s32.totalorder %s1910_s23, 1  ;;  %p149_p7 = scmp.eq.s32.totalorder %s146_s29, 0 }
   0xf   : > { %p1993_p8 = por %p168_p5, %p167_p3  ;;  %p243_p9 = scmp.lt.s32.totalorder %s1910_s23, 3 }
  0x10   : > { %s1999_s6 = scalar_select %p149_p7, %s1898_s20, %s151_s27  }
  0x11   : > { %p244_p10 = pnand %p1319_p6, %p243_p9 }
  0x12   : > { %p300_p11 = scmp.lt.s32.totalorder (!%p244_p10), %s1902_s21, 1  ;;  %s2376_s0 = sld [smem:[#allocation8_spill]] (!%p244_p10)  ;;  %vm453_vm0 = vcmask (!%p244_p10), 523264  }
  0x13   : > { %247 = sbr.rel (%p244_p10) target bundleno = 826 (0x33a), region = 32  ;;  %s2177_s25 = sand.u32 (!%p244_p10), 1, %s1894_s19  }
  0x14   : > { %s1320_s27 = sshll.u32 (!%p244_p10), %s2177_s25, 6  ;;  %s1098_s14 = scalar_lea.sflag (!%p244_p10), [#allocation3], %s2177_s25 }
  0x15   : > { %s2184_s29 = scalar_lea.vmem (!%p244_p10), [#allocation2], %s1320_s27  ;;  %s1912_s16 = smov (!%p244_p10), [#allocation2]  }
  0x16   : > { %s1122_s10 = sshll.u32 (!%p244_p10), %s2184_s29, 4  ;;  %s1804_s17 = sshll.u32 (!%p244_p10), %s1912_s16, 4  ;;  %s2241_s10 = int_to_ptr.vmem [resolvable:$true] %s1122_s10  ;;  %s1805_s17 = int_to_ptr.vmem [resolvable:$false] %s1804_s17 }
  0x17   : > { %p1807_p1 = scmp.lt.s32.totalorder (!%p244_p10), %s2241_s10, %s1805_s17 }
  0x1a   : > { %s2003_s7 = scalar_select %p300_p11, %s1902_s21, 1 }
  0x1c   : > { %s1398_s8 = sshll.u32 %s2003_s7, 6  ;;  %s1399_s9 = sshll.u32 %s2003_s7, 5 }
  0x1d   : > { %s313_s12 = scalar_lea.vmem %s2368_s1, %s1399_s9  ;;  %s2015_s15 = scalar_lea.vmem %s2376_s0, %s1398_s8 }
  0x1e   : > { %v1692_v0 = vld [vmem:[%s313_s12] sm:$0xff]   ;;  %v1693_v1 = vld [vmem:[%s313_s12 + $0x8] sm:$0xff]   ;;  %v1694_v2 = vld [vmem:[%s313_s12 + $0x10] sm:$0xff]   ;;  %s2033_s24 = scalar_lea.vmem %s2369_s2, %s1398_s8  ;;  %s2187_s8 = scalar_lea.vmem [#allocation4], %s1320_s27 }
  0x1f   : > { %1558 = vmatprep.subr.bf16.mxu0 %v1692_v0  ;;  %v333_v3 = vld [vmem:[%s2015_s15] sm:$0xf]  ;;  %v334_v4 = vld [vmem:[%s2015_s15 + $0x4] sm:$0xf]  ;;  %v335_v7 = vld [vmem:[%s2015_s15 + $0x8] sm:$0xf] }
  0x20   : > { %1559 = vmatpush3.bf16.msra.mxu0 %v1692_v0  ;;  %v349_v5 = vmul.bf16 1040203264, %v333_v3  ;;  %v350_v6 = vmul.bf16 1040203264, %v334_v4  ;;  %v336_v8 = vld [vmem:[%s2015_s15 + $0xc] sm:$0xf] }
  0x21   : > { %1560 = vmatprep.subr.bf16.mxu0 %v1693_v1  ;;  %v337_v10 = vld [vmem:[%s2015_s15 + $0x10] sm:$0xf]  ;;  %v1695_v11 = vld [vmem:[%s313_s12 + $0x18] sm:$0xff]   ;;  %v338_v12 = vld [vmem:[%s2015_s15 + $0x14] sm:$0xf]  ;;  %s1434_s9 = sshll.u32 %s1902_s21, 10 }
  0x22   : > { %v1330_v9 = vcombine.low %v349_v5, %v350_v6  ;;  %v351_v13 = vmul.bf16 1040203264, %v335_v7  ;;  %v352_v14 = vmul.bf16 1040203264, %v336_v8  ;;  %v353_v15 = vmul.bf16 1040203264, %v337_v10  ;;  %s2239_s13 = scalar_lea.hbm %s2371_s4, %s1434_s9 }
  0x23   : > { %v339_v16 = vld [vmem:[%s2015_s15 + $0x18] sm:$0xf]  ;;  %v340_v17 = vld [vmem:[%s2015_s15 + $0x1c] sm:$0xf]  ;;  %v354_v18 = vmul.bf16 1040203264, %v338_v12 }
  0x24   : > { %1561 = vmatpush3.bf16.msra.mxu0 %v1693_v1  ;;  %1566 = vmatprep.mubr.msk.bf16.mxu0 %vm453_vm0, %v1330_v9  ;;  %v341_v19 = vld [vmem:[%s2015_s15 + $0x20] sm:$0xf]  ;;  %v342_v20 = vld [vmem:[%s2015_s15 + $0x24] sm:$0xf]  ;;  %v355_v21 = vmul.bf16 1040203264, %v339_v16  ;;  %v1331_v23 = vcombine.low %v351_v13, %v352_v14 }
  0x25   : > { %1562 = vmatprep.subr.bf16.mxu0 %v1694_v2  ;;  %v356_v22 = vmul.bf16 1040203264, %v340_v17  ;;  %v357_v24 = vmul.bf16 1040203264, %v341_v19  ;;  %v358_v25 = vmul.bf16 1040203264, %v342_v20  ;;  %v1332_v26 = vcombine.low %v353_v15, %v354_v18 }
  0x26   : > { %v343_v29 = vld [vmem:[%s2015_s15 + $0x28] sm:$0xf]  ;;  %v344_v30 = vld [vmem:[%s2015_s15 + $0x2c] sm:$0xf]  ;;  %v345_v31 = vld [vmem:[%s2015_s15 + $0x30] sm:$0xf] }
  0x27   : > { %v1333_v27 = vcombine.low %v355_v21, %v356_v22  ;;  %v1334_v28 = vcombine.low %v357_v24, %v358_v25  ;;  %v346_v32 = vld [vmem:[%s2015_s15 + $0x34] sm:$0xf]  ;;  %v359_v33 = vmul.bf16 1040203264, %v343_v29  ;;  %v360_v34 = vmul.bf16 1040203264, %v344_v30 }
  0x28   : > { %1563 = vmatpush3.bf16.msra.mxu0 %v1694_v2  ;;  %v361_v35 = vmul.bf16 1040203264, %v345_v31  ;;  %v362_v36 = vmul.bf16 1040203264, %v346_v32  ;;  %v347_v39 = vld [vmem:[%s2015_s15 + $0x38] sm:$0xf] }
  0x29   : > { %1564 = vmatprep.subr.bf16.mxu0 %v1695_v11  ;;  %v1335_v37 = vcombine.low %v359_v33, %v360_v34  ;;  %v348_v40 = vld [vmem:[%s2015_s15 + $0x3c] sm:$0xf]  ;;  %v363_v41 = vmul.bf16 1040203264, %v347_v39  ;;  %v1696_v60 = vld [vmem:[%s2033_s24] sm:$0xff]   ;;  %s1800_s15 = scalar_lea.vmem %s2241_s10, 1024 }
  0x2a   : > { %v1336_v38 = vcombine.low %v361_v35, %v362_v36  ;;  %v364_v42 = vmul.bf16 1040203264, %v348_v40  ;;  %1614 = vmatprep.subr.bf16.mxu1 %v1696_v60  ;;  %p1801_p12 = scmp.ne.s32.totalorder %s2241_s10, %s1800_s15 }
  0x2b   : > { %1622 = vmatpush3.bf16.msra.mxu1 %v1696_v60 }
  0x2c   : > { %1565 = vmatpush3.bf16.msra.mxu0 %v1695_v11  ;;  %v1337_v43 = vcombine.low %v363_v41, %v364_v42  ;;  %p1802_p13 = pnand %p1801_p12, %p1986_p4 }
  0x2d   : > { %1582 = vmatprep.subr.bf16.mxu0 %v1696_v60 }
  0x2e   : > { %p1803_p0 = pneg %p1802_p13 }
  0x2f   : > { %1567 = vmatmul.mubr.msk.bf16.vlgmr.msra.gmra.mrb[0].mxu0 %vm453_vm0, %v1331_v23 }
  0x30   : > { %1570 = vmatprep.mubr.msk.bf16.mxu0 %vm453_vm0, %v1332_v26  ;;  %1583 = vmatpush3.bf16.msra.mxu0 %v1696_v60 }
  0x37   : > { %1571 = vmatmul.mubr.msk.bf16.gmra.mrb[4].mxu0 %vm453_vm0, %v1333_v27 }
  0x38   : > { %1574 = vmatprep.mubr.msk.bf16.mxu0 %vm453_vm0, %v1334_v28 }
  0x3f   : > { %1575 = vmatmul.mubr.msk.bf16.gmra.mrb[8].mxu0 %vm453_vm0, %v1335_v37 }
  0x40   : > { %1578 = vmatprep.mubr.msk.bf16.mxu0 %vm453_vm0, %v1336_v38 }
  0x47   : > { %1579 = vmatmul.mubr.msk.bf16.gmra.mrb[12].mxu0 %vm453_vm0, %v1337_v43 }
 0x102   : > { %v2048_v44 = vpop.f32.mrb[0].mxu0 }
 0x103   : > { %v512_v45 = vpop.f32.mrb[1].mxu0 }
 0x104   : > { %575 = vmax.xlane.f32.xlu0 %v512_v45  ;;  %v2050_v46 = vpop.f32.mrb[2].mxu0 }
 0x105   : > { %v515_v47 = vpop.f32.mrb[3].mxu0 }
 0x106   : > { %577 = vmax.xlane.f32.xlu1 %v515_v47 }
 0x10a   : > { %v1572_v48 = vpop.f32.mrb[4].mxu0 }
 0x10b   : > { %587 = vmax.xlane.f32.xlu1 %v1572_v48  ;;  %v528_v49 = vpop.f32.mrb[5].mxu0 }
 0x10c   : > { %583 = vmax.xlane.f32.xlu0 %v528_v49  ;;  %v1573_v50 = vpop.f32.mrb[6].mxu0 }
 0x10d   : > { %v531_v51 = vpop.f32.mrb[7].mxu0 }
 0x10f   : > { %589 = vmax.xlane.f32.xlu1 %v1573_v50 }
 0x110   : > { %585 = vmax.xlane.f32.xlu0 %v531_v51 }
 0x112   : > { %v1576_v52 = vpop.f32.mrb[8].mxu0 }
 0x113   : > { %v544_v53 = vpop.f32.mrb[9].mxu0 }
 0x114   : > { %595 = vmax.xlane.f32.xlu0 %v1576_v52  ;;  %v1577_v54 = vpop.f32.mrb[10].mxu0 }
 0x115   : > { %597 = vmax.xlane.f32.xlu1 %v1577_v54  ;;  %v547_v55 = vpop.f32.mrb[11].mxu0 }
 0x118   : > { %591 = vmax.xlane.f32.xlu0 %v544_v53 }
 0x119   : > { %593 = vmax.xlane.f32.xlu1 %v547_v55 }
 0x11a   : > { %v2052_v56 = vpop.f32.mrb[12].mxu0 }
 0x11b   : > { %v2054_v57 = vpop.f32.mrb[13].mxu0 }
 0x11c   : > { %579 = vmax.xlane.f32.xlu0 %v2048_v44  ;;  %v2057_v58 = vpop.f32.mrb[14].mxu0 }
 0x11d   : > { %581 = vmax.xlane.f32.xlu1 %v2050_v46  ;;  %v2060_v59 = vpop.f32.mrb[15].mxu0 }
 0x120   : > { %599 = vmax.xlane.f32.xlu0 %v2054_v57 }
 0x121   : > { %601 = vmax.xlane.f32.xlu1 %v2060_v59 }
 0x124   : > { %603 = vmax.xlane.f32.xlu0 %v2052_v56 }
 0x125   : > { %605 = vmax.xlane.f32.xlu1 %v2057_v58 }
 0x191   : > { %v576_v61 = vpop.xlane.xlu0 %575 }
 0x192   : > { %v2067_v62 = vsub.f32 %v512_v45, %v576_v61 }
 0x193   : > { %v578_v63 = vpop.xlane.xlu1 %577 }
 0x194   : > { %v623_v0 = vmul.f32 1.442695, %v2067_v62  ;;  %v2070_v1 = vsub.f32 %v515_v47, %v578_v63  ;;  %v1697_v47 = vld [vmem:[%s2033_s24 + $0x8] sm:$0xff]   ;;  %v1700_v63 = vld [vmem:[%s2033_s24 + $0x20] sm:$0xff]  }
 0x195   : > { %1615 = vmatprep.subr.bf16.mxu1 %v1697_v47  ;;  %1584 = vmatprep.subr.bf16.mxu0 %v1697_v47 }
 0x196   : > { %1704 = vpow2.f32 %v623_v0  ;;  %v625_v2 = vmul.f32 1.442695, %v2070_v1  ;;  %1623 = vmatpush3.bf16.msra.mxu1 %v1697_v47  ;;  %1585 = vmatpush3.bf16.msra.mxu0 %v1697_v47 }
 0x198   : > { %1706 = vpow2.f32 %v625_v2  ;;  %v588_v3 = vpop.xlane.xlu1 %587 }
 0x199   : > { %v2073_v4 = vsub.f32 %v1572_v48, %v588_v3  ;;  %v584_v5 = vpop.xlane.xlu0 %583  ;;  %v1701_v3 = vld [vmem:[%s2033_s24 + $0x28] sm:$0xff]  }
 0x19a   : > { %v2075_v6 = vsub.f32 %v528_v49, %v584_v5  ;;  %v1702_v5 = vld [vmem:[%s2033_s24 + $0x30] sm:$0xff]  }
 0x19b   : > { %v635_v7 = vmul.f32 1.442695, %v2073_v4 }
 0x19c   : > { %v631_v8 = vmul.f32 1.442695, %v2075_v6  ;;  %v590_v9 = vpop.xlane.xlu1 %589 }
 0x19d   : > { %1708 = vpow2.f32 %v635_v7  ;;  %v2079_v10 = vsub.f32 %v1573_v50, %v590_v9  ;;  %v586_v11 = vpop.xlane.xlu0 %585  ;;  %v1703_v7 = vld [vmem:[%s2033_s24 + $0x38] sm:$0xff]  }
 0x19e   : > { %v2081_v12 = vsub.f32 %v531_v51, %v586_v11  ;;  %1710 = vpow2.f32 %v631_v8 }
 0x19f   : > { %v637_v13 = vmul.f32 1.442695, %v2079_v10 }
 0x1a0   : > { %v2084_v14 = vpop.eup %1704  ;;  %v633_v15 = vmul.f32 1.442695, %v2081_v12 }
 0x1a1   : > { %1712 = vpow2.f32 %v637_v13  ;;  %v596_v16 = vpop.xlane.xlu0 %595  ;;  %655 = vadd.xlane.f32.xlu0 %v2084_v14 }
 0x1a2   : > { %v2088_v17 = vpop.eup %1706  ;;  %v2090_v18 = vsub.f32 %v1576_v52, %v596_v16  ;;  %v598_v19 = vpop.xlane.xlu1 %597  ;;  %1714 = vpow2.f32 %v633_v15 }
 0x1a3   : > { %v2092_v20 = vsub.f32 %v1577_v54, %v598_v19  ;;  %657 = vadd.xlane.f32.xlu1 %v2088_v17 }
 0x1a4   : > { %v643_v21 = vmul.f32 1.442695, %v2090_v18 }
 0x1a5   : > { %v645_v22 = vmul.f32 1.442695, %v2092_v20  ;;  %v592_v23 = vpop.xlane.xlu0 %591 }
 0x1a6   : > { %1716 = vpow2.f32 %v643_v21  ;;  %v2097_v24 = vsub.f32 %v544_v53, %v592_v23  ;;  %v594_v25 = vpop.xlane.xlu1 %593 }
 0x1a7   : > { %v2099_v26 = vpop.eup %1708  ;;  %v2101_v27 = vsub.f32 %v547_v55, %v594_v25  ;;  %1718 = vpow2.f32 %v645_v22  ;;  %v1698_v55 = vld [vmem:[%s2033_s24 + $0x10] sm:$0xff]  }
 0x1a8   : > { %v639_v28 = vmul.f32 1.442695, %v2097_v24  ;;  %667 = vadd.xlane.f32.xlu0 %v2099_v26  ;;  %v2106_v31 = vpop.eup %1710  ;;  %1616 = vmatprep.subr.bf16.mxu1 %v1698_v55 }
 0x1a9   : > { %v641_v29 = vmul.f32 1.442695, %v2101_v27  ;;  %v580_v30 = vpop.xlane.xlu0 %579  ;;  %1586 = vmatprep.subr.bf16.mxu0 %v1698_v55  ;;  %1624 = vmatpush3.bf16.msra.mxu1 %v1698_v55 }
 0x1aa   : > { %1720 = vpow2.f32 %v639_v28  ;;  %v2109_v32 = vsub.f32 %v2048_v44, %v580_v30  ;;  %v582_v33 = vpop.xlane.xlu1 %581  ;;  %1587 = vmatpush3.bf16.msra.mxu0 %v1698_v55 }
 0x1ab   : > { %v2111_v34 = vpop.eup %1712  ;;  %v2114_v35 = vsub.f32 %v2050_v46, %v582_v33  ;;  %1722 = vpow2.f32 %v641_v29 }
 0x1ac   : > { %v627_v36 = vmul.f32 1.442695, %v2109_v32  ;;  %663 = vadd.xlane.f32.xlu0 %v2106_v31  ;;  %669 = vadd.xlane.f32.xlu1 %v2111_v34  ;;  %v2123_v41 = vpop.eup %1714 }
 0x1ad   : > { %v629_v37 = vmul.f32 1.442695, %v2114_v35  ;;  %v600_v38 = vpop.xlane.xlu0 %599 }
 0x1ae   : > { %1724 = vpow2.f32 %v627_v36  ;;  %v2121_v39 = vsub.f32 %v2054_v57, %v600_v38  ;;  %v602_v40 = vpop.xlane.xlu1 %601 }
 0x1af   : > { %v2126_v42 = vsub.f32 %v2060_v59, %v602_v40  ;;  %1726 = vpow2.f32 %v629_v37  ;;  %v1699_v59 = vld [vmem:[%s2033_s24 + $0x18] sm:$0xff]   ;;  %s1806_s24 = scalar_lea.vmem %s1805_s17, 2048 }
 0x1b0   : > { %v2128_v43 = vpop.eup %1716  ;;  %v647_v44 = vmul.f32 1.442695, %v2121_v39  ;;  %665 = vadd.xlane.f32.xlu1 %v2123_v41  ;;  %1617 = vmatprep.subr.bf16.mxu1 %v1699_v59  ;;  %p1808_p2 = scmp.lt.s32.totalorder %s1806_s24, %s1800_s15 }
 0x1b1   : > { %v649_v45 = vmul.f32 1.442695, %v2126_v42  ;;  %675 = vadd.xlane.f32.xlu0 %v2128_v43  ;;  %v604_v46 = vpop.xlane.xlu0 %603  ;;  %v2138_v50 = vpop.eup %1718  ;;  %1625 = vmatpush3.bf16.msra.mxu1 %v1699_v59 }
 0x1b2   : > { %1728 = vpow2.f32 %v647_v44  ;;  %v2136_v48 = vsub.f32 %v2052_v56, %v604_v46  ;;  %v606_v49 = vpop.xlane.xlu1 %605  ;;  %1588 = vmatprep.subr.bf16.mxu0 %v1699_v59  ;;  %1618 = vmatprep.subr.bf16.mxu1 %v1700_v63  ;;  %p1809_p3 = por %p1808_p2, %p1807_p1 }
 0x1b3   : > { %v2141_v51 = vsub.f32 %v2057_v58, %v606_v49  ;;  %1730 = vpow2.f32 %v649_v45  ;;  %1589 = vmatpush3.bf16.msra.mxu0 %v1699_v59 }
 0x1b4   : > { %v2143_v52 = vpop.eup %1720  ;;  %v651_v53 = vmul.f32 1.442695, %v2136_v48  ;;  %677 = vadd.xlane.f32.xlu1 %v2138_v50  ;;  %1590 = vmatprep.subr.bf16.mxu0 %v1700_v63  ;;  %p1810_p5 = pnand %p1809_p3, %p1803_p0 }
 0x1b5   : > { %v653_v54 = vmul.f32 1.442695, %v2141_v51  ;;  %671 = vadd.xlane.f32.xlu0 %v2143_v52  ;;  %v2150_v56 = vpop.eup %1722  ;;  %1626 = vmatpush3.bf16.msra.mxu1 %v1700_v63 }
 0x1b6   : > { %1732 = vpow2.f32 %v651_v53  ;;  %1619 = vmatprep.subr.bf16.mxu1 %v1701_v3 }
 0x1b7   : > { %1734 = vpow2.f32 %v653_v54  ;;  %1591 = vmatpush3.bf16.msra.mxu0 %v1700_v63 }
 0x1b8   : > { %v2152_v57 = vpop.eup %1724  ;;  %673 = vadd.xlane.f32.xlu1 %v2150_v56  ;;  %1592 = vmatprep.subr.bf16.mxu0 %v1701_v3 }
 0x1b9   : > { %659 = vadd.xlane.f32.xlu0 %v2152_v57  ;;  %v2156_v58 = vpop.eup %1726  ;;  %1627 = vmatpush3.bf16.msra.mxu1 %v1701_v3 }
 0x1ba   : > { %1620 = vmatprep.subr.bf16.mxu1 %v1702_v5 }
 0x1bb   : > { %1593 = vmatpush3.bf16.msra.mxu0 %v1701_v3 }
 0x1bc   : > { %v2159_v60 = vpop.eup %1728  ;;  %661 = vadd.xlane.f32.xlu1 %v2156_v58  ;;  %1594 = vmatprep.subr.bf16.mxu0 %v1702_v5 }
 0x1bd   : > { %679 = vadd.xlane.f32.xlu0 %v2159_v60  ;;  %v2163_v61 = vpop.eup %1730  ;;  %1628 = vmatpush3.bf16.msra.mxu1 %v1702_v5 }
 0x1be   : > { %1621 = vmatprep.subr.bf16.mxu1 %v1703_v7 }
 0x1bf   : > { %1595 = vmatpush3.bf16.msra.mxu0 %v1702_v5 }
 0x1c0   : > { %v2166_v0 = vpop.eup %1732  ;;  %681 = vadd.xlane.f32.xlu1 %v2163_v61  ;;  %1596 = vmatprep.subr.bf16.mxu0 %v1703_v7 }
 0x1c1   : > { %683 = vadd.xlane.f32.xlu0 %v2166_v0  ;;  %v2170_v2 = vpop.eup %1734  ;;  %1629 = vmatpush3.bf16.msra.mxu1 %v1703_v7 }
 0x1c3   : > { %1597 = vmatpush3.bf16.msra.mxu0 %v1703_v7 }
 0x1c4   : > { %685 = vadd.xlane.f32.xlu1 %v2170_v2 }
 0x22e   : > { %v656_v8 = vpop.xlane.xlu0 %655 }
 0x22f   : > { %1736 = vrcp.f32 %v656_v8 }
 0x230   : > { %1738 = vlog2.f32 %v656_v8  ;;  %v658_v9 = vpop.xlane.xlu1 %657 }
 0x231   : > { %1740 = vrcp.f32 %v658_v9 }
 0x232   : > { %1742 = vlog2.f32 %v658_v9 }
 0x235   : > { %v668_v11 = vpop.xlane.xlu0 %667 }
 0x236   : > { %1744 = vrcp.f32 %v668_v11 }
 0x237   : > { %1746 = vlog2.f32 %v668_v11 }
 0x239   : > { %v1737_v13 = vpop.eup %1736  ;;  %v664_v15 = vpop.xlane.xlu0 %663 }
 0x23a   : > { %v670_v16 = vpop.xlane.xlu1 %669  ;;  %v1739_v19 = vpop.eup %1738  ;;  %1748 = vrcp.f32 %v664_v15  ;;  %v703_v25 = vmul.f32 %v1737_v13, %v2084_v14 }
 0x23b   : > { %v1741_v21 = vpop.eup %1740  ;;  %v720_v22 = vmul.f32 0.6931472, %v1739_v19  ;;  %1750 = vlog2.f32 %v664_v15 }
 0x23c   : > { %v1743_v23 = vpop.eup %1742  ;;  %1752 = vrcp.f32 %v670_v16  ;;  %v704_v28 = vmul.f32 %v1741_v21, %v2088_v17 }
 0x23d   : > { %v722_v29 = vmul.f32 0.6931472, %v1743_v23  ;;  %1754 = vlog2.f32 %v670_v16  ;;  %v751_v37 = vsub.f32 %v2067_v62, %v720_v22 }
 0x23e   : > { %v666_v30 = vpop.xlane.xlu1 %665  ;;  %v676_v33 = vpop.xlane.xlu0 %675  ;;  %v767_v36 = vpack.c.bf16 %v704_v28, %v703_v25 }
 0x23f   : > { %1756 = vrcp.f32 %v666_v30  ;;  %v752_v38 = vsub.f32 %v2070_v1, %v722_v29 }
 0x240   : > { %1758 = vlog2.f32 %v666_v30  ;;  %1598 = vmatprep.mubr.bf16.mxu0 %v767_v36  ;;  %1440 = vst [vmem:[%s2184_s29] sm:$0xff] %v767_v36   ;;  %v1745_v40 = vpop.eup %1744 }
 0x241   : > { %1760 = vrcp.f32 %v676_v33  ;;  %v1479_v14 = vpack.c.bf16 %v752_v38, %v751_v37  ;;  %v1747_v45 = vpop.eup %1746  ;;  %v709_v59 = vmul.f32 %v1745_v40, %v2099_v26 }
 0x242   : > { %1762 = vlog2.f32 %v676_v33  ;;  %v678_v17 = vpop.xlane.xlu1 %677  ;;  %v672_v44 = vpop.xlane.xlu0 %671  ;;  %v732_v49 = vmul.f32 0.6931472, %v1747_v45 }
 0x243   : > { %1764 = vrcp.f32 %v678_v17  ;;  %1480 = vst [vmem:[%s2187_s8] sm:$0xff] %v1479_v14  }
 0x244   : > { %1766 = vlog2.f32 %v678_v17  ;;  %v1749_v62 = vpop.eup %1748  ;;  %v757_v16 = vsub.f32 %v2073_v4, %v732_v49 }
 0x245   : > { %1768 = vrcp.f32 %v672_v44  ;;  %v1751_v1 = vpop.eup %1750  ;;  %v707_v9 = vmul.f32 %v1749_v62, %v2106_v31 }
 0x246   : > { %1770 = vlog2.f32 %v672_v44  ;;  %v674_v46 = vpop.xlane.xlu1 %673  ;;  %v1753_v47 = vpop.eup %1752  ;;  %v728_v55 = vmul.f32 0.6931472, %v1751_v1 }
 0x247   : > { %1772 = vrcp.f32 %v674_v46  ;;  %v660_v53 = vpop.xlane.xlu0 %659  ;;  %v1755_v54 = vpop.eup %1754  ;;  %v710_v63 = vmul.f32 %v1753_v47, %v2111_v34 }
 0x248   : > { %1774 = vlog2.f32 %v674_v46  ;;  %v734_v5 = vmul.f32 0.6931472, %v1755_v54  ;;  %v755_v22 = vsub.f32 %v2075_v6, %v728_v55 }
 0x249   : > { %v1757_v3 = vpop.eup %1756  ;;  %1776 = vrcp.f32 %v660_v53  ;;  %v770_v13 = vpack.c.bf16 %v710_v63, %v709_v59 }
 0x24a   : > { %v1759_v7 = vpop.eup %1758  ;;  %1778 = vlog2.f32 %v660_v53  ;;  %v662_v8 = vpop.xlane.xlu1 %661  ;;  %v708_v11 = vmul.f32 %v1757_v3, %v2123_v41  ;;  %v758_v19 = vsub.f32 %v2079_v10, %v734_v5 }
 0x24b   : > { %v1761_v15 = vpop.eup %1760  ;;  %v730_v26 = vmul.f32 0.6931472, %v1759_v7  ;;  %1780 = vrcp.f32 %v662_v8  ;;  %v680_v34 = vpop.xlane.xlu0 %679  ;;  %1518 = vst [vmem:[%s2184_s29 + $0x18] sm:$0xff] %v770_v13  }
 0x24c   : > { %v1763_v21 = vpop.eup %1762  ;;  %1782 = vlog2.f32 %v662_v8  ;;  %v769_v23 = vpack.c.bf16 %v708_v11, %v707_v9  ;;  %v1494_v25 = vpack.c.bf16 %v758_v19, %v757_v16  ;;  %v713_v29 = vmul.f32 %v1761_v15, %v2128_v43 }
 0x24d   : > { %v1765_v31 = vpop.eup %1764  ;;  %v756_v41 = vsub.f32 %v2081_v12, %v730_v26  ;;  %v740_v28 = vmul.f32 0.6931472, %v1763_v21  ;;  %1784 = vrcp.f32 %v680_v34 }
 0x24e   : > { %v1767_v4 = vpop.eup %1766  ;;  %1786 = vlog2.f32 %v680_v34  ;;  %1602 = vmatprep.mubr.bf16.mxu1 %v769_v23  ;;  %1517 = vst [vmem:[%s2184_s29 + $0x10] sm:$0xff] %v769_v23   ;;  %v682_v10 = vpop.xlane.xlu1 %681  ;;  %v714_v6 = vmul.f32 %v1765_v31, %v2138_v50  ;;  %1525 = vst [vmem:[%s2187_s8 + $0x18] sm:$0xff] %v1494_v25  }
 0x24f   : > { %v1769_v30 = vpop.eup %1768  ;;  %v1489_v33 = vpack.c.bf16 %v756_v41, %v755_v22  ;;  %v742_v36 = vmul.f32 0.6931472, %v1767_v4  ;;  %1788 = vrcp.f32 %v682_v10  ;;  %v684_v37 = vpop.xlane.xlu0 %683  ;;  %1603 = vmatmul.mubr.bf16.vlgmr.msra.gmra.mrb[0].mxu1 %v770_v13  ;;  %v761_v17 = vsub.f32 %v2090_v18, %v740_v28 }
 0x250   : > { %v1771_v12 = vpop.eup %1770  ;;  %1790 = vlog2.f32 %v682_v10  ;;  %v772_v38 = vpack.c.bf16 %v714_v6, %v713_v29  ;;  %v711_v45 = vmul.f32 %v1769_v30, %v2143_v52 }
 0x251   : > { %v1773_v14 = vpop.eup %1772  ;;  %1524 = vst [vmem:[%s2187_s8 + $0x10] sm:$0xff] %v1489_v33   ;;  %v762_v40 = vsub.f32 %v2092_v20, %v742_v36  ;;  %v736_v43 = vmul.f32 0.6931472, %v1771_v12  ;;  %1792 = vrcp.f32 %v684_v37 }
 0x252   : > { %v1775_v50 = vpop.eup %1774  ;;  %1794 = vlog2.f32 %v684_v37  ;;  %v686_v44 = vpop.xlane.xlu1 %685  ;;  %v712_v62 = vmul.f32 %v1773_v14, %v2150_v56  ;;  %1520 = vst [vmem:[%s2184_s29 + $0x28] sm:$0xff] %v772_v38  }
 0x253   : > { %v1777_v1 = vpop.eup %1776  ;;  %v1504_v46 = vpack.c.bf16 %v762_v40, %v761_v17  ;;  %v738_v47 = vmul.f32 0.6931472, %v1775_v50  ;;  %1796 = vrcp.f32 %v686_v44  ;;  %v759_v53 = vsub.f32 %v2097_v24, %v736_v43 }
 0x254   : > { %v1779_v49 = vpop.eup %1778  ;;  %1798 = vlog2.f32 %v686_v44  ;;  %v771_v18 = vpack.c.bf16 %v712_v62, %v711_v45  ;;  %v705_v56 = vmul.f32 %v1777_v1, %v2152_v57 }
 0x255   : > { %v1781_v20 = vpop.eup %1780  ;;  %1527 = vst [vmem:[%s2187_s8 + $0x28] sm:$0xff] %v1504_v46   ;;  %v760_v54 = vsub.f32 %v2101_v27, %v738_v47  ;;  %v724_v55 = vmul.f32 0.6931472, %v1779_v49 }
 0x256   : > { %v1783_v52 = vpop.eup %1782  ;;  %v706_v59 = vmul.f32 %v1781_v20, %v2156_v58  ;;  %1606 = vmatprep.mubr.bf16.mxu1 %v771_v18  ;;  %1519 = vst [vmem:[%s2184_s29 + $0x20] sm:$0xff] %v771_v18  }
 0x257   : > { %v1785_v63 = vpop.eup %1784  ;;  %v1499_v3 = vpack.c.bf16 %v760_v54, %v759_v53  ;;  %v726_v5 = vmul.f32 0.6931472, %v1783_v52  ;;  %1607 = vmatmul.mubr.bf16.gmra.mrb[4].mxu1 %v772_v38  ;;  %v753_v24 = vsub.f32 %v2109_v32, %v724_v55 }
 0x258   : > { %v1787_v7 = vpop.eup %1786  ;;  %v768_v8 = vpack.c.bf16 %v706_v59, %v705_v56  ;;  %v715_v58 = vmul.f32 %v1785_v63, %v2159_v60 }
 0x259   : > { %v1789_v9 = vpop.eup %1788  ;;  %1526 = vst [vmem:[%s2187_s8 + $0x20] sm:$0xff] %v1499_v3   ;;  %v754_v27 = vsub.f32 %v2114_v35, %v726_v5  ;;  %v744_v11 = vmul.f32 0.6931472, %v1787_v7 }
 0x25a   : > { %v1791_v57 = vpop.eup %1790  ;;  %1599 = vmatmul.mubr.bf16.vlgmr.msra.gmra.mrb[16].mxu0 %v768_v8  ;;  %1516 = vst [vmem:[%s2184_s29 + $0x8] sm:$0xff] %v768_v8   ;;  %v716_v13 = vmul.f32 %v1789_v9, %v2163_v61 }
 0x25b   : > { %v1793_v15 = vpop.eup %1792  ;;  %v1484_v16 = vpack.c.bf16 %v754_v27, %v753_v24  ;;  %v746_v19 = vmul.f32 0.6931472, %v1791_v57  ;;  %v763_v32 = vsub.f32 %v2121_v39, %v744_v11 }
 0x25c   : > { %v1795_v26 = vpop.eup %1794  ;;  %v773_v34 = vpack.c.bf16 %v716_v13, %v715_v58  ;;  %v717_v60 = vmul.f32 %v1793_v15, %v2166_v0 }
 0x25d   : > { %v1797_v21 = vpop.eup %1796  ;;  %1523 = vst [vmem:[%s2187_s8 + $0x8] sm:$0xff] %v1484_v16   ;;  %v764_v35 = vsub.f32 %v2126_v42, %v746_v19  ;;  %v748_v22 = vmul.f32 0.6931472, %v1795_v26 }
 0x25e   : > { %v1799_v23 = vpop.eup %1798  ;;  %1610 = vmatprep.mubr.bf16.mxu1 %v773_v34  ;;  %1521 = vst [vmem:[%s2184_s29 + $0x30] sm:$0xff] %v773_v34   ;;  %v718_v61 = vmul.f32 %v1797_v21, %v2170_v2 }
 0x25f   : > { %v1509_v31 = vpack.c.bf16 %v764_v35, %v763_v32  ;;  %v750_v25 = vmul.f32 0.6931472, %v1799_v23  ;;  %v765_v39 = vsub.f32 %v2136_v48, %v748_v22 }
 0x260   : > { %v774_v41 = vpack.c.bf16 %v718_v61, %v717_v60 }
 0x261   : > { %1528 = vst [vmem:[%s2187_s8 + $0x30] sm:$0xff] %v1509_v31   ;;  %v766_v42 = vsub.f32 %v2141_v51, %v750_v25 }
 0x262   : > { %1611 = vmatmul.mubr.bf16.gmra.mrb[8].mxu1 %v774_v41  ;;  %1522 = vst [vmem:[%s2184_s29 + $0x38] sm:$0xff] %v774_v41  }
 0x263   : > { %v1514_v28 = vpack.c.bf16 %v766_v42, %v765_v39 }
 0x265   : > { %1529 = vst [vmem:[%s2187_s8 + $0x38] sm:$0xff] %v1514_v28  }
 0x266   : > { %1813 = shalt.err (!%p1810_p5)
}
 0x267   : > { %s1814_s27 = scalar_lea.hbm %s2239_s13, 1024  ;;  %s1818_s12 = scalar_lea.hbm %s2371_s4, 2048 }
 0x268   : > { %p1815_p6 = scmp.ne.s32.totalorder %s2239_s13, %s1814_s27  ;;  %p1819_p10 = scmp.lt.u32.totalorder %s2239_s13, %s2371_s4 }
 0x269   : > { %p1820_p11 = scmp.lt.u32.totalorder %s1818_s12, %s1814_s27  ;;  %p1822_p13 = scmp.lt.u32.totalorder %s1814_s27, %s2239_s13 }
 0x26a   : > { %p1816_p7 = pnand %p1815_p6, %p1986_p4 }
 0x26b   : > { %p1821_p12 = por %p1820_p11, %p1819_p10 }
 0x26c   : > { %p1817_p9 = pneg %p1816_p7 }
 0x26d   : > { %p1823_p0 = por %p1822_p13, %p1821_p12 }
 0x26f   : > { %p1824_p1 = pnand %p1823_p0, %p1817_p9 }
 0x271   : > { %1827 = shalt.err (!%p1824_p1)
}
 0x272   : > { %s1913_s15 = smov 64   ;;  %s1914_s24 = smov 4  }
 0x273   : > { %1630 = dma.vmem_to_hbm [thread:$0]  (%p1986_p4), %s2241_s10, 1024, %s2239_s13, %s1098_s14, %s1913_s15, %s1913_s15, %s1914_s24  }
 0x274   : > { %s2275_s11 = scalar_lea.hbm %s2372_s5, %s1434_s9  ;;  %s1140_s12 = sshll.u32 %s2187_s8, 4  ;;  %s2278_s12 = int_to_ptr.vmem [resolvable:$true] %s1140_s12 }
 0x275   : > { %s1103_s16 = scalar_lea.sflag [#allocation5], %s2177_s25  ;;  %s1828_s17 = scalar_lea.vmem %s2278_s12, 1024 }
 0x276   : > { %p1829_p2 = scmp.ne.s32.totalorder %s2278_s12, %s1828_s17  ;;  %s1915_s0 = smov [#allocation4]  }
 0x277   : > { %s1832_s10 = sshll.u32 %s1915_s0, 4  ;;  %s1833_s10 = int_to_ptr.vmem [resolvable:$false] %s1832_s10 }
 0x278   : > { %p1830_p3 = pnand %p1829_p2, %p1986_p4  ;;  %s1834_s21 = scalar_lea.vmem %s1833_s10, 2048 }
 0x279   : > { %p1835_p6 = scmp.lt.s32.totalorder %s2278_s12, %s1833_s10  ;;  %p1836_p7 = scmp.lt.s32.totalorder %s1834_s21, %s1828_s17 }
 0x27a   : > { %p1831_p5 = pneg %p1830_p3 }
 0x27b   : > { %p1837_p9 = por %p1836_p7, %p1835_p6 }
 0x27d   : > { %p1838_p10 = pnand %p1837_p9, %p1831_p5 }
 0x27f   : > { %1841 = shalt.err (!%p1838_p10)
}
 0x280   : > { %s1842_s8 = scalar_lea.hbm %s2275_s11, 1024  ;;  %s1846_s0 = scalar_lea.hbm %s2372_s5, 2048 }
 0x281   : > { %p1843_p11 = scmp.ne.s32.totalorder %s2275_s11, %s1842_s8  ;;  %p1847_p0 = scmp.lt.u32.totalorder %s2275_s11, %s2372_s5 }
 0x282   : > { %p1848_p1 = scmp.lt.u32.totalorder %s1846_s0, %s1842_s8  ;;  %p1850_p3 = scmp.lt.u32.totalorder %s1842_s8, %s2275_s11 }
 0x283   : > { %p1844_p12 = pnand %p1843_p11, %p1986_p4 }
 0x284   : > { %p1849_p2 = por %p1848_p1, %p1847_p0 }
 0x285   : > { %p1845_p13 = pneg %p1844_p12 }
 0x286   : > { %p1851_p5 = por %p1850_p3, %p1849_p2 }
 0x288   : > { %p1852_p6 = pnand %p1851_p5, %p1845_p13 }
 0x28a   : > { %1855 = shalt.err (!%p1852_p6)
}
 0x28b   : > { %1631 = dma.vmem_to_hbm [thread:$0]  (%p1986_p4), %s2278_s12, 1024, %s2275_s11, %s1103_s16, %s1913_s15, %s1913_s15, %s1914_s24  }
 0x28c   : > { %s1401_s29 = sshll.u32 %s2003_s7, 7 }
 0x28d   : > { %s2311_s21 = scalar_lea.vmem %s2370_s3, %s1401_s29 }
 0x322   : > { %v1604_v48 = vpop.f32.mrb[0].mxu1 }
 0x323   : > { %926 = vst.msk [vmem:[%s2311_s21 + $0x30] sm:$0xff] %vm453_vm0, %v1604_v48  ;;  %v873_v51 = vpop.f32.mrb[1].mxu1 }
 0x324   : > { %924 = vst.msk [vmem:[%s2311_s21 + $0x20] sm:$0xff] %vm453_vm0, %v873_v51  ;;  %v1605_v0 = vpop.f32.mrb[2].mxu1 }
 0x325   : > { %927 = vst.msk [vmem:[%s2311_s21 + $0x38] sm:$0xff] %vm453_vm0, %v1605_v0  ;;  %v876_v2 = vpop.f32.mrb[3].mxu1 }
 0x326   : > { %925 = vst.msk [vmem:[%s2311_s21 + $0x28] sm:$0xff] %vm453_vm0, %v876_v2 }
 0x32a   : > { %v1608_v4 = vpop.f32.mrb[4].mxu1 }
 0x32b   : > { %930 = vst.msk [vmem:[%s2311_s21 + $0x50] sm:$0xff] %vm453_vm0, %v1608_v4  ;;  %v889_v10 = vpop.f32.mrb[5].mxu1 }
 0x32c   : > { %928 = vst.msk [vmem:[%s2311_s21 + $0x40] sm:$0xff] %vm453_vm0, %v889_v10  ;;  %v1609_v29 = vpop.f32.mrb[6].mxu1 }
 0x32d   : > { %931 = vst.msk [vmem:[%s2311_s21 + $0x58] sm:$0xff] %vm453_vm0, %v1609_v29  ;;  %v1600_v6 = vpop.f32.mrb[16].mxu0  ;;  %v892_v30 = vpop.f32.mrb[7].mxu1 }
 0x32e   : > { %922 = vst.msk [vmem:[%s2311_s21 + $0x10] sm:$0xff] %vm453_vm0, %v1600_v6  ;;  %929 = vst.msk [vmem:[%s2311_s21 + $0x48] sm:$0xff] %vm453_vm0, %v892_v30  ;;  %v857_v33 = vpop.f32.mrb[17].mxu0 }
 0x32f   : > { %920 = vst.msk [vmem:[%s2311_s21] sm:$0xff] %vm453_vm0, %v857_v33  ;;  %v1601_v36 = vpop.f32.mrb[18].mxu0 }
 0x330   : > { %923 = vst.msk [vmem:[%s2311_s21 + $0x18] sm:$0xff] %vm453_vm0, %v1601_v36  ;;  %v860_v37 = vpop.f32.mrb[19].mxu0 }
 0x331   : > { %921 = vst.msk [vmem:[%s2311_s21 + $0x8] sm:$0xff] %vm453_vm0, %v860_v37 }
 0x335   : > { %v1612_v12 = vpop.f32.mrb[8].mxu1 }
 0x336   : > { %934 = vst.msk [vmem:[%s2311_s21 + $0x70] sm:$0xff] %vm453_vm0, %v1612_v12  ;;  %v905_v38 = vpop.f32.mrb[9].mxu1 }
 0x337   : > { %932 = vst.msk [vmem:[%s2311_s21 + $0x60] sm:$0xff] %vm453_vm0, %v905_v38  ;;  %v1613_v14 = vpop.f32.mrb[10].mxu1 }
 0x338   : > { %935 = vst.msk [vmem:[%s2311_s21 + $0x78] sm:$0xff] %vm453_vm0, %v1613_v14  ;;  %v908_v17 = vpop.f32.mrb[11].mxu1 }
 0x339   : > { %933 = vst.msk [vmem:[%s2311_s21 + $0x68] sm:$0xff] %vm453_vm0, %v908_v17 }
 0x33a PF: > { %p1641_p4 = scmp.ge.s32.totalorder %s1910_s23, 2  ;;  %s1167_s28 = sand.u32 1, %s1890_s18  }
 0x33b   : > { %s1168_s7 = scalar_lea.sflag [#allocation3], %s1167_s28 }
 0x33c   : > { %p1635_p7 = pnand %p1641_p4, %p1993_p8 }
 0x33e   : > { %1881 = dma.done.wait (!%p1635_p7), %s1168_s7, 1024  }
 0x33f   : > { %1883 = vsyncadd (!%p1635_p7), %s1168_s7, 4294966272  ;;  %s1177_s25 = scalar_lea.sflag [#allocation5], %s1167_s28 }
 0x340   : > { %1885 = dma.done.wait (!%p1635_p7), %s1177_s25, 1024  }
 0x341   : > { %1887 = vsyncadd (!%p1635_p7), %s1177_s25, 4294966272  ;;  %s22_s23 = sadd.s32 1, %s1910_s23   ;;  %s2377_s18 = smov %s1894_s19 }
 0x342   : > { %p19_p9 = scmp.ge.s32.totalorder %s22_s23, 4   ;;  %s2378_s19 = smov %s1898_s20 }
 0x343   : > { %s2379_s20 = smov %s1999_s6  ;;  %s2380_s21 = smov %s1906_s22 }
 0x344   : > { %s2381_s22 = smov %s2383_s26  ;;  %21 = sbr.rel (!%p19_p9) target bundleno = 8 (0x8), region = 102 }
 0x34b   :  { %1182 = vsyncpa [#allocation3], 1 }
 0x34c   :  { %1184 = vsyncpa [#allocation3 + $0x1], 1 }
 0x34d   :  { %1185 = vsyncpa [#allocation5], 1 }
 0x34e   :  { %1187 = vsyncpa [#allocation5 + $0x1], 1 }

</bundles_post_ra>
